<compile_context>
chip_gen: v7x
topology: tpu7x:2x2x1
jax: 0.10.0
libtpu: 0.0.40
codegen_flags: <defaults>
</compile_context>

<pallas_src>
import jax
import jax.numpy as jnp
from jax.experimental import pallas as pl
from jax.experimental.pallas import tpu as pltpu


def _round_up(v, m):
    return (v + m - 1) // m * m


def _num_tensorcores():
    """Best-effort TensorCore count of the local device (1 if unknown)."""
    try:
        d = jax.devices()[0]
        for attr in ("num_cores", "core_count"):
            v = getattr(d, attr, None)
            if isinstance(v, int) and v > 0:
                return v
    except Exception:
        pass
    return 1


def _vmem_capacity_bytes():
    """Physical VMEM capacity; falls back to the v7x lower bound (always safe)."""
    try:
        return int(pltpu.get_tpu_info().vmem_capacity_bytes)
    except Exception:
        return 64 << 20


def model_kernel(x0_ref, x1_ref, o_ref):
    # x0_ref: (c0_blk, TL) tile of x[0] (channels 0..c0_blk-1, c0_blk >= 3)
    # x1_ref: (C, TL) tile of x[1];  o_ref: (C, TL)
    c0 = x0_ref[0:1, :]                       # (1, TL)
    c1 = x0_ref[1:2, :]                       # (1, TL)
    c2 = x0_ref[2:3, :]                       # (1, TL)
    v3 = x1_ref[...]                          # (C, TL)

    v4 = jnp.abs(c0 - c2)                     # (1, TL)
    v5 = v4 * v3                              # broadcast -> (C, TL)
    v7 = c1 - c2                              # (1, TL)
    v8 = jnp.maximum(v5, 0.0)                 # relu(v5)
    v9 = v8 + c1                              # broadcast -> (C, TL)
    v11 = jnp.maximum(v7, 0.0)                # relu(v7), (1, TL)
    # Exact division (matches torch's v9 / v11 semantics incl. inf/nan cases);
    # HBM-bound kernel, so the per-element divide is hidden under DMA.
    o_ref[...] = v9 / v11                     # broadcast -> (C, TL)


def model_forward(x, *, target_block_bytes=2 << 20, vmem_budget_bytes=16 << 20):
    N, C, H, W = x.shape
    assert N >= 2 and C >= 3, "forward reads x[0, 0:3] and x[1, :]"
    L = H * W
    itemsize = jnp.dtype(x.dtype).itemsize
    x_flat = x.reshape(N, C, L)               # free bitcast-reshape

    # Batch-0 block only needs channels 0..2.  Use the full dim when C <= 8,
    # otherwise an 8-channel block (divisible by 8 -> satisfies the (8,128)
    # rule for any C) so large-C inputs don't DMA unused channels.
    c0_blk = C if C <= 8 else 8

    # dtype-aware sublane padding: f32 -> 8, bf16 -> 16, int8/fp8 -> 32
    sub = max(8, (8 * 4) // itemsize)
    # 3 blocks (2 inputs + 1 output), each double-buffered.
    vmem_per_lane = 2 * itemsize * (_round_up(c0_blk, sub) + 2 * _round_up(C, sub))

    vmem_cap = _vmem_capacity_bytes()
    budget = min(vmem_budget_bytes, vmem_cap // 4)
    ncores = _num_tensorcores()

    if L <= 128:
        # TODO(synk): for tiny planes with many channels a (C, L<128) output
        # block lowers to masked vst; transposing C onto the lane axis would
        # fix that, but it is irrelevant at these shapes.
        tl = L
    else:
        l128 = pl.cdiv(L, 128) * 128          # L rounded up to full lanes
        tl_vmem = max(128, (budget // vmem_per_lane) // 128 * 128)
        tl_tgt = max(128, (target_block_bytes // (_round_up(C, sub) * itemsize)) // 128 * 128)
        if ncores >= 2 and l128 // 128 >= 2 * ncores:
            # Dual-TC (v7x): even, balanced grid with >= 2 steps per core so the
            # double-buffer pipeline stays busy on both cores.
            steps = max(2 * ncores, pl.cdiv(l128, min(tl_vmem, tl_tgt)))
            steps = _round_up(steps, ncores)
            tl = min(tl_vmem, max(128, _round_up(pl.cdiv(L, steps), 128)))
        else:
            # Single-TC (v5e/v6e): fewest, largest lane-dense tiles (no
            # artificial grid >= 2 cap -- it only adds per-step overhead).
            tl = min(tl_vmem, tl_tgt, l128)
    grid = (pl.cdiv(L, tl),)

    cost = pl.CostEstimate(
        flops=int((6 * C + 4) * L),
        transcendentals=0,
        bytes_accessed=int((c0_blk + 2 * C) * L * itemsize),
    )

    out_flat = pl.pallas_call(
        model_kernel,
        out_shape=jax.ShapeDtypeStruct((C, L), x.dtype),
        grid=grid,
        in_specs=[
            # batch 0 of x, first c0_blk channels only; N dim squeezed away
            pl.BlockSpec((pl.Squeezed(), c0_blk, tl), lambda i: (0, 0, i)),
            # batch 1 of x, all channels
            pl.BlockSpec((pl.Squeezed(), C, tl), lambda i: (1, 0, i)),
        ],
        out_specs=pl.BlockSpec((C, tl), lambda i: (0, i)),
        compiler_params=pltpu.CompilerParams(
            dimension_semantics=("parallel",),
            vmem_limit_bytes=int(min(32 << 20, vmem_cap // 2)),
        ),
        cost_estimate=cost,
    )(x_flat, x_flat)

    return out_flat.reshape(C, H, W)


def model_ref(x):
    v2 = x[0]
    v3 = x[1]
    v4 = jnp.abs(v2[0] - v2[2])
    v5 = v4 * v3
    v6 = v2[1]
    v7 = v2[1] - v2[2]
    v8 = jax.nn.relu(v5)
    v9 = v8 + v6
    v11 = jax.nn.relu(v7)
    return v9 / v11


if __name__ == "__main__":
    key = jax.random.PRNGKey(0)
    N, C, H, W = 2, 4, 16, 16
    x = jax.random.uniform(key, (N, C, H, W), dtype=jnp.float32)
    # Ensure the relu'd denominator is strictly positive so the check is finite
    # (the kernel itself handles the general case exactly like the PyTorch code).
    x = x.at[0, 1].set(x[0, 2] + 1.0)

    out = jax.block_until_ready(model_forward(x))
    ref = model_ref(x)

    assert out.shape == (C, H, W)
    assert jnp.allclose(out, ref, rtol=1e-6, atol=1e-6), "mismatch vs reference"
    print("KERNEL_OK")
</pallas_src>

<mosaic_0001>
module attributes {stable_mosaic.version = 11 : i64} {
  func.func @model_kernel(%arg0: i32, %arg1: memref<1x4x256xf32, #tpu.memory_space<vmem>>, %arg2: memref<1x4x256xf32, #tpu.memory_space<vmem>>, %arg3: memref<4x256xf32, #tpu.memory_space<vmem>>) attributes {dimension_semantics = [#tpu.dimension_semantics<parallel>], iteration_bounds = array<i64: 1>, scalar_prefetch = 0 : i64, scratch_operands = 0 : i64, tpu.core_type = #tpu.core_type<tc>, window_params = [{transform_indices = @transform_0, window_bounds = array<i64: 1, 4, 256>}, {transform_indices = @transform_1, window_bounds = array<i64: 1, 4, 256>}, {transform_indices = @transform_2, window_bounds = array<i64: 4, 256>}]} {
    %c0 = arith.constant 0 : index
    %c0_0 = arith.constant 0 : index
    %c0_1 = arith.constant 0 : index
    %0 = vector.load %arg1[%c0, %c0_0, %c0_1] : memref<1x4x256xf32, #tpu.memory_space<vmem>>, vector<1x1x256xf32>
    %1 = vector.shape_cast %0 : vector<1x1x256xf32> to vector<1x256xf32>
    %c0_2 = arith.constant 0 : index
    %c1 = arith.constant 1 : index
    %c0_3 = arith.constant 0 : index
    %2 = vector.load %arg1[%c0_2, %c1, %c0_3] : memref<1x4x256xf32, #tpu.memory_space<vmem>>, vector<1x1x256xf32>
    %3 = vector.shape_cast %2 : vector<1x1x256xf32> to vector<1x256xf32>
    %c0_4 = arith.constant 0 : index
    %c2 = arith.constant 2 : index
    %c0_5 = arith.constant 0 : index
    %4 = vector.load %arg1[%c0_4, %c2, %c0_5] : memref<1x4x256xf32, #tpu.memory_space<vmem>>, vector<1x1x256xf32>
    %5 = vector.shape_cast %4 : vector<1x1x256xf32> to vector<1x256xf32>
    %c0_6 = arith.constant 0 : index
    %c0_7 = arith.constant 0 : index
    %c0_8 = arith.constant 0 : index
    %6 = vector.load %arg2[%c0_6, %c0_7, %c0_8] : memref<1x4x256xf32, #tpu.memory_space<vmem>>, vector<1x4x256xf32>
    %7 = vector.shape_cast %6 : vector<1x4x256xf32> to vector<4x256xf32>
    %8 = arith.subf %1, %5 : vector<1x256xf32>
    %9 = math.absf %8 : vector<1x256xf32>
    %10 = vector.broadcast %9 : vector<1x256xf32> to vector<4x256xf32>
    %11 = arith.mulf %10, %7 : vector<4x256xf32>
    %12 = arith.subf %3, %5 : vector<1x256xf32>
    %cst = arith.constant 0.000000e+00 : f32
    %13 = vector.broadcast %cst : f32 to vector<4x256xf32>
    %14 = arith.maximumf %11, %13 : vector<4x256xf32>
    %15 = vector.broadcast %3 : vector<1x256xf32> to vector<4x256xf32>
    %16 = arith.addf %14, %15 : vector<4x256xf32>
    %cst_9 = arith.constant 0.000000e+00 : f32
    %17 = vector.broadcast %cst_9 : f32 to vector<1x256xf32>
    %18 = arith.maximumf %12, %17 : vector<1x256xf32>
    %19 = vector.broadcast %18 : vector<1x256xf32> to vector<4x256xf32>
    %20 = arith.divf %16, %19 : vector<4x256xf32>
    %c0_10 = arith.constant 0 : index
    %c0_11 = arith.constant 0 : index
    %21 = vector.load %arg3[%c0_10, %c0_11] : memref<4x256xf32, #tpu.memory_space<vmem>>, vector<4x256xf32>
    tpu.vector_store %arg3[%c0_10, %c0_11], %20 {strides = array<i32>} : memref<4x256xf32, #tpu.memory_space<vmem>>, vector<4x256xf32>,
    return
  }
  func.func @transform_0(%arg0: i32) -> (i32, i32, i32) {
    %c0_i32 = arith.constant 0 : i32
    %c0_i32_0 = arith.constant 0 : i32
    %c0_i32_1 = arith.constant 0 : i32
    return %c0_i32, %c0_i32_0, %arg0 : i32, i32, i32
  }
  func.func @transform_1(%arg0: i32) -> (i32, i32, i32) {
    %c1_i32 = arith.constant 1 : i32
    %c0_i32 = arith.constant 0 : i32
    %c0_i32_0 = arith.constant 0 : i32
    return %c1_i32, %c0_i32, %arg0 : i32, i32, i32
  }
  func.func @transform_2(%arg0: i32) -> (i32, i32) {
    %c0_i32 = arith.constant 0 : i32
    %c0_i32_0 = arith.constant 0 : i32
    return %c0_i32, %arg0 : i32, i32
  }
}

</mosaic_0001>

<bundles_post_ra>
// kernel: tpu_custom_call.1
= control target key start
LH: loop header
LB: loop body
LE: loop exit
PB: predicated region body
PF: predicated region fallthrough
CT: control target
= control target key end

     0   :  { %7 = vsyncpa [#allocation3], 0  ;;  %s257_s0 = inlined_call_operand.hbm [shape: f32[2,4,256], index: 0, kind: input, shape index: {}]   ;;  %s258_s1 = inlined_call_operand.hbm [shape: f32[2,4,256], index: 1, kind: input, shape index: {}]   ;;  %s259_s2 = inlined_call_operand.hbm [shape: f32[4,256], index: 2, kind: output, shape index: {}]  }
   0x1   :  { %8 = vsyncpa [#allocation6], 0 }
   0x2   :  { %9 = vsyncpa [#allocation4], 0  ;;  %s218_s11 = scalar_lea.hbm %s258_s1, 128  ;;  %s197_s12 = smov [#allocation2]  }
   0x3   :  { %s16_s13 = sshll.u32 %s197_s12, 4  ;;  %s198_s14 = smov [#allocation5]   ;;  %s17_s13 = int_to_ptr.vmem [resolvable:$true] %s16_s13 }
   0x4   :  { %s27_s15 = sshll.u32 %s198_s14, 4  ;;  %s122_s18 = scalar_lea.hbm %s257_s0, 128  ;;  %s28_s15 = int_to_ptr.vmem [resolvable:$true] %s27_s15 }
   0x5   :  { %p123_p0 = scmp.ne.s32.totalorder %s257_s0, %s122_s18  ;;  %s124_s23 = scalar_lea.hbm %s257_s0, 256 }
   0x6   :  { %p125_p1 = scmp.lt.u32.totalorder %s124_s23, %s122_s18  ;;  %p126_p2 = scmp.lt.u32.totalorder %s122_s18, %s257_s0 }
   0x8   :  { %p127_p3 = por %p126_p2, %p125_p1 }
   0xa   :  { %p128_p4 = pnand %p127_p3, %p123_p0 }
   0xc   :  { %131 = shalt.err (!%p128_p4)
}
   0xd   :  { %s132_s26 = scalar_lea.vmem %s17_s13, 128  ;;  %p137_p6 = scmp.lt.s32.totalorder %s17_s13, %s17_s13 }
   0xe   :  { %p133_p5 = scmp.ne.s32.totalorder %s17_s13, %s132_s26  ;;  %p138_p7 = scmp.lt.s32.totalorder %s132_s26, %s132_s26 }
  0x10   :  { %p139_p8 = por %p138_p7, %p137_p6 }
  0x12   :  { %p140_p9 = pnand %p139_p8, %p133_p5 }
  0x14   :  { %143 = shalt.err (!%p140_p9)
}
  0x15   :  { %19 = dma.hbm_to_vmem [thread:$0]  %s257_s0, 128, %s17_s13, [#allocation3]  }
  0x16   :  { %s168_s3 = scalar_lea.hbm %s258_s1, 256  ;;  %p147_p11 = scmp.lt.u32.totalorder %s218_s11, %s258_s1 }
  0x17   :  { %p145_p10 = scmp.ne.s32.totalorder %s218_s11, %s168_s3  ;;  %p148_p12 = scmp.lt.u32.totalorder %s168_s3, %s168_s3 }
  0x18   :  { %p150_p0 = scmp.lt.u32.totalorder %s168_s3, %s218_s11 }
  0x19   :  { %p149_p13 = por %p148_p12, %p147_p11 }
  0x1b   :  { %p151_p1 = por %p150_p0, %p149_p13 }
  0x1d   :  { %p152_p2 = pnand %p151_p1, %p145_p10 }
  0x1f   :  { %155 = shalt.err (!%p152_p2)
}
  0x20   :  { %s156_s6 = scalar_lea.vmem %s28_s15, 128  ;;  %p161_p4 = scmp.lt.s32.totalorder %s28_s15, %s28_s15 }
  0x21   :  { %p157_p3 = scmp.ne.s32.totalorder %s28_s15, %s156_s6  ;;  %p162_p5 = scmp.lt.s32.totalorder %s156_s6, %s156_s6 }
  0x23   :  { %p163_p6 = por %p162_p5, %p161_p4 }
  0x25   :  { %p164_p7 = pnand %p163_p6, %p157_p3 }
  0x27   :  { %167 = shalt.err (!%p164_p7)
}
  0x28   :  { %30 = dma.hbm_to_vmem [thread:$0]  %s218_s11, 128, %s28_s15, [#allocation6]  }
  0x29   :  { %191 = dma.done.wait [#allocation3], 128  }
  0x2a   :  { %192 = vsyncadd [#allocation3], 4294967168 }
  0x2b   :  { %193 = dma.done.wait [#allocation6], 128  }
  0x2c   :  { %194 = vsyncadd [#allocation6], 4294967168  ;;  %v46_v0 = vlaneseq  ;;  %v37_v2 = vld [vmem:[#allocation2] ss:$4 sm:$0x3]  ;;  %v42_v5 = vld [vmem:[#allocation5] sm:$0xff] }
  0x2d   :  { %v39_v3 = vld [vmem:[#allocation2 + $0x1] ss:$4 sm:$0x3]  ;;  %v41_v4 = vld [vmem:[#allocation2 + $0x2] ss:$4 sm:$0x3]  ;;  %v57_v11 = vcombine.high %v42_v5, %v42_v5 }
  0x2e   :  { %v47_v1 = vshrl.u32 %v46_v0, 7  ;;  %v43_v6 = vsub.f32 %v37_v2, %v41_v4  ;;  %v61_v9 = vsub.f32 %v39_v3, %v41_v4  ;;  %s199_s0 = smov [#allocation7]  }
  0x2f   :  { %s104_s1 = sshll.u32 %s199_s0, 4  ;;  %s105_s1 = int_to_ptr.vmem [resolvable:$true] %s104_s1 }
  0x30   :  { %v48_v7 = vsub.s32 0, %v47_v1  ;;  %v52_v8 = vsub.s32 1, %v47_v1  ;;  %v44_v10 = vand.u32 2147483647, %v43_v6  ;;  %v77_v12 = vmax.f32 %v61_v9, 0.0  ;;  %s169_s7 = scalar_lea.vmem %s105_s1, 128  ;;  %p174_p9 = scmp.lt.s32.totalorder %s105_s1, %s105_s1 }
  0x31   :  { %p170_p8 = scmp.ne.s32.totalorder %s105_s1, %s169_s7  ;;  %p175_p10 = scmp.lt.s32.totalorder %s169_s7, %s169_s7 }
  0x32   :  { %v49_v13 = vrot.slane %v44_v10, %v48_v7  ;;  %v53_v14 = vrot.slane %v44_v10, %v52_v8  ;;  %v82_v15 = vrot.slane %v77_v12, %v48_v7  ;;  %v86_v16 = vrot.slane %v77_v12, %v52_v8 }
  0x33   :  { %v68_v20 = vrot.slane %v39_v3, %v48_v7  ;;  %v72_v22 = vrot.slane %v39_v3, %v52_v8  ;;  %p176_p11 = por %p175_p10, %p174_p9 }
  0x34   :  { %v59_v17 = vmul.f32 %v49_v13, %v42_v5  ;;  %v60_v18 = vmul.f32 %v57_v11, %v53_v14  ;;  %118 = vrcp.f32 %v82_v15 }
  0x35   :  { %120 = vrcp.f32 %v86_v16  ;;  %p177_p12 = pnand %p176_p11, %p170_p8 }
  0x36   :  { %v62_v19 = vmax.f32 %v59_v17, 0.0  ;;  %v63_v21 = vmax.f32 %v60_v18, 0.0 }
  0x38   :  { %v75_v23 = vadd.f32 %v68_v20, %v62_v19  ;;  %v76_v24 = vadd.f32 %v72_v22, %v63_v21 }
  0x3e   :  { %v119_v25 = vpop.eup %118 }
  0x3f   :  { %v121_v26 = vpop.eup %120  ;;  %v90_v27 = vmul.f32 %v119_v25, %v75_v23 }
  0x40   :  { %v92_v28 = vmul.f32 %v121_v26, %v76_v24 }
  0x42   :  { %v95_v29 = vcombine.low %v90_v27, %v92_v28 }
  0x44   :  { %97 = vst [vmem:[#allocation7] sm:$0xff] %v95_v29 }
  0x45   :  { %180 = shalt.err (!%p177_p12)
}
  0x46   :  { %s181_s10 = scalar_lea.hbm %s259_s2, 128 }
  0x47   :  { %p182_p13 = scmp.ne.s32.totalorder %s259_s2, %s181_s10  ;;  %p185_p0 = scmp.lt.u32.totalorder %s181_s10, %s259_s2 }
  0x49   :  { %p187_p1 = pnand %p185_p0, %p182_p13 }
  0x4b   :  { %190 = shalt.err (!%p187_p1)
}
  0x4c   :  { %107 = dma.vmem_to_hbm [thread:$0]  %s105_s1, 128, %s259_s2, [#allocation4]  }
  0x4d   :  { %195 = dma.done.wait [#allocation4], 128  }
  0x4e   :  { %196 = vsyncadd [#allocation4], 4294967168 }
  0x4f   :  { %111 = vsyncpa [#allocation3], 1 }
  0x50   :  { %112 = vsyncpa [#allocation6], 1 }
  0x51   :  { %113 = vsyncpa [#allocation4], 1 }

</bundles_post_ra>
